<compile_context>
chip_gen: v7x
topology: tpu7x:2x2x1
jax: 0.10.0
libtpu: 0.0.40
codegen_flags: <defaults>
</compile_context>

<pallas_src>
import jax
import jax.numpy as jnp
from jax import lax
from jax.experimental import pallas as pl
from jax.experimental.pallas import tpu as pltpu


def lstm_tagger_kernel(ids_ref,    # SMEM (B, T)    int32  token ids (scalar-prefetched)
                       pre_ref,    # VMEM (V, 4H)   f32    emb @ W_ih^T + (b_ih + b_hh)
                       whh_ref,    # VMEM (H, 4H)   f32    weight_hh_l0^T
                       wtag_ref,   # VMEM (H, Gpad) f32    hidden2tag.weight^T (lane-padded)
                       btag_ref,   # VMEM (1, Gpad) f32    tag bias (padded lanes = -1e30)
                       out_ref):   # VMEM (T, Gpad) f32    log-softmax scores for sentence b
    b = pl.program_id(0)
    T = out_ref.shape[0]
    H = whh_ref.shape[0]

    # ---- Gather this sentence's pre-projected gate rows ------------------
    # Kept as T separate (1, 4H) values (one vreg each): no (T, 4H) sublane
    # pack and no per-step sublane extract inside the recurrence.
    pre_rows = [pre_ref[pl.ds(ids_ref[b, t], 1), :] for t in range(T)]

    # Loop-invariant recurrent weight, loaded once.
    whh = whh_ref[...]                                               # (H, 4H)

    # ---- Serial LSTM recurrence, fully unrolled (T is static & tiny) -----
    h = jnp.zeros((1, H), jnp.float32)
    c = jnp.zeros((1, H), jnp.float32)
    h_rows = []
    for t in range(T):
        gates = pre_rows[t] + jnp.dot(h, whh,
                                      preferred_element_type=jnp.float32)  # (1, 4H)
        # 2 EUP pushes per step instead of 4: activate the whole gate vreg,
        # then extract the i/f/g/o lane groups (PyTorch order) with lane
        # slices (XLU work, off the EUP critical path).
        sig = jax.nn.sigmoid(gates)
        tnh = jnp.tanh(gates)
        i_g = sig[:, 0 * H:1 * H]
        f_g = sig[:, 1 * H:2 * H]
        g_g = tnh[:, 2 * H:3 * H]
        o_g = sig[:, 3 * H:4 * H]
        c = f_g * c + i_g * g_g
        h = o_g * jnp.tanh(c)
        h_rows.append(h)

    hs = jnp.concatenate(h_rows, axis=0)                             # (T, H)

    # ---- hidden2tag linear + log_softmax over the lane-dense tag dim -----
    logits = jnp.dot(hs, wtag_ref[...],
                     preferred_element_type=jnp.float32) + btag_ref[...]  # (T, Gpad)
    m = jnp.max(logits, axis=1, keepdims=True)
    lse = jnp.log(jnp.sum(jnp.exp(logits - m), axis=1, keepdims=True)) + m
    out_ref[...] = logits - lse


def lstm_tagger_forward(sentences, emb, w_ih_T, w_hh_T, b_gates, w_tag_T, b_tag):
    """Log-softmax tag scores.

    `sentences` is (T,) for the original single-sentence module semantics, or
    (B, T) to amortize launch/DMA overhead over a "parallel" grid axis.
    Returns (T, tagset) or (B, T, tagset) accordingly.
    """
    squeeze = sentences.ndim == 1
    if squeeze:
        sentences = sentences[None, :]
    B, T = sentences.shape
    V = emb.shape[0]
    H = w_hh_T.shape[0]
    G4 = 4 * H
    tagset = w_tag_T.shape[1]

    # Fold Embedding -> input projection -> fused gate bias into one table:
    # emb_proj[id] == emb[id] @ W_ih^T + (b_ih + b_hh).  One tiny (V,E)@(E,4H)
    # matmul per parameter set, cacheable, off the kernel's serial path.
    emb_proj = (emb @ w_ih_T + b_gates).astype(jnp.float32)          # (V, 4H)

    # Clamp ids: dynamic VMEM row gathers are not bounds-checked on TPU.
    ids = jnp.clip(sentences.astype(jnp.int32), 0, V - 1)

    # Lane-dense output: pad the tag dim to a multiple of 128 lanes.
    tag_pad = 128 * pl.cdiv(tagset, 128)
    w_tag_pad = jnp.zeros((H, tag_pad), jnp.float32).at[:, :tagset].set(w_tag_T)
    b_tag_pad = jnp.full((1, tag_pad), -1e30, jnp.float32).at[:, :tagset].set(b_tag)

    grid_spec = pltpu.PrefetchScalarGridSpec(
        num_scalar_prefetch=1,                 # ids -> SMEM before the grid runs
        grid=(B,),
        in_specs=[
            # Constant index_maps: weights are DMA'd once and stay VMEM-resident.
            pl.BlockSpec((V, G4), lambda b, ids: (0, 0)),
            pl.BlockSpec((H, G4), lambda b, ids: (0, 0)),
            pl.BlockSpec((H, tag_pad), lambda b, ids: (0, 0)),
            pl.BlockSpec((1, tag_pad), lambda b, ids: (0, 0)),
        ],
        out_specs=pl.BlockSpec((None, T, tag_pad), lambda b, ids: (b, 0, 0)),
    )

    out_padded = pl.pallas_call(
        lstm_tagger_kernel,
        out_shape=jax.ShapeDtypeStruct((B, T, tag_pad), jnp.float32),
        grid_spec=grid_spec,
        compiler_params=pltpu.CompilerParams(
            dimension_semantics=("parallel",)),   # sentence axis shards across TCs on v7x
    )(ids, emb_proj, w_hh_T, w_tag_pad, b_tag_pad)

    out = out_padded[:, :, :tagset]
    return out[0] if squeeze else out


def reference_forward(sentence, emb, w_ih_T, w_hh_T, b_gates, w_tag_T, b_tag):
    """Pure-JAX reference matching nn.Embedding -> nn.LSTM -> Linear -> log_softmax."""
    H = w_hh_T.shape[0]
    x_seq = emb[sentence]                                            # (T, E)

    def cell(carry, x):
        h, c = carry
        gates = x[None, :] @ w_ih_T + h @ w_hh_T + b_gates
        i = jax.nn.sigmoid(gates[:, 0 * H:1 * H])
        f = jax.nn.sigmoid(gates[:, 1 * H:2 * H])
        g = jnp.tanh(gates[:, 2 * H:3 * H])
        o = jax.nn.sigmoid(gates[:, 3 * H:4 * H])
        c = f * c + i * g
        h = o * jnp.tanh(c)
        return (h, c), h[0]

    init = (jnp.zeros((1, H), jnp.float32), jnp.zeros((1, H), jnp.float32))
    _, hs = lax.scan(cell, init, x_seq)                              # (T, H)
    logits = hs @ w_tag_T + b_tag
    return jax.nn.log_softmax(logits, axis=1)


if __name__ == "__main__":
    # Small shapes consistent with the module's forward (seq-major, batch=1).
    SEQ_LEN = 8
    EMBED_DIM = 32
    HIDDEN_DIM = 32
    VOCAB_SIZE = 20
    TAGSET_SIZE = 8
    NUM_SENTENCES = 4          # exercised as a "parallel" grid axis

    key = jax.random.PRNGKey(0)
    ks = jax.random.split(key, 8)

    # Deterministic parameter init (PyTorch-style uniform ranges).
    emb = jax.random.normal(ks[0], (VOCAB_SIZE, EMBED_DIM), jnp.float32)
    bound = 1.0 / jnp.sqrt(jnp.float32(HIDDEN_DIM))
    w_ih = jax.random.uniform(ks[1], (4 * HIDDEN_DIM, EMBED_DIM), jnp.float32,
                              -bound, bound)
    w_hh = jax.random.uniform(ks[2], (4 * HIDDEN_DIM, HIDDEN_DIM), jnp.float32,
                              -bound, bound)
    b_ih = jax.random.uniform(ks[3], (4 * HIDDEN_DIM,), jnp.float32, -bound, bound)
    b_hh = jax.random.uniform(ks[4], (4 * HIDDEN_DIM,), jnp.float32, -bound, bound)
    w_tag = jax.random.uniform(ks[5], (TAGSET_SIZE, HIDDEN_DIM), jnp.float32,
                               -bound, bound)
    b_tag = jax.random.uniform(ks[6], (TAGSET_SIZE,), jnp.float32, -bound, bound)

    # Kernel-friendly parameter layout (transposed weights, fused gate bias).
    w_ih_T = w_ih.T                                   # (E, 4H)
    w_hh_T = w_hh.T                                   # (H, 4H)
    b_gates = (b_ih + b_hh)[None, :]                  # (1, 4H)
    w_tag_T = w_tag.T                                 # (H, Tag)
    b_tag_r = b_tag[None, :]                          # (1, Tag)

    sentences = jax.random.randint(ks[7], (NUM_SENTENCES, SEQ_LEN), 0,
                                   VOCAB_SIZE, jnp.int32)

    # Batched (gridded) path.
    out = lstm_tagger_forward(sentences, emb, w_ih_T, w_hh_T, b_gates,
                              w_tag_T, b_tag_r)
    out = jax.block_until_ready(out)
    assert out.shape == (NUM_SENTENCES, SEQ_LEN, TAGSET_SIZE)

    for bidx in range(NUM_SENTENCES):
        ref = reference_forward(sentences[bidx], emb, w_ih_T, w_hh_T, b_gates,
                                w_tag_T, b_tag_r)
        assert jnp.allclose(out[bidx], ref, atol=1e-5, rtol=1e-5), bidx

    # Single-sentence path (original module's forward signature).
    out1 = lstm_tagger_forward(sentences[0], emb, w_ih_T, w_hh_T, b_gates,
                               w_tag_T, b_tag_r)
    out1 = jax.block_until_ready(out1)
    assert out1.shape == (SEQ_LEN, TAGSET_SIZE)
    assert jnp.allclose(out1, out[0], atol=1e-6, rtol=1e-6)

    print("KERNEL_OK")
</pallas_src>

<mosaic_0001>
module attributes {stable_mosaic.version = 11 : i64} {
  func.func @lstm_tagger_kernel(%arg0: i32, %arg1: memref<4x8xi32, #tpu.memory_space<smem>>, %arg2: memref<20x128xf32, #tpu.memory_space<vmem>>, %arg3: memref<32x128xf32, #tpu.memory_space<vmem>>, %arg4: memref<32x128xf32, #tpu.memory_space<vmem>>, %arg5: memref<1x128xf32, #tpu.memory_space<vmem>>, %arg6: memref<1x8x128xf32, #tpu.memory_space<vmem>>) attributes {dimension_semantics = [#tpu.dimension_semantics<parallel>], iteration_bounds = array<i64: 4>, scalar_prefetch = 1 : i64, scratch_operands = 0 : i64, tpu.core_type = #tpu.core_type<tc>, window_params = [{pipeline_mode = #tpu.pipeline_mode<synchronous>, transform_indices = @transform_0, window_bounds = array<i64: 20, 128>}, {pipeline_mode = #tpu.pipeline_mode<synchronous>, transform_indices = @transform_1, window_bounds = array<i64: 32, 128>}, {pipeline_mode = #tpu.pipeline_mode<synchronous>, transform_indices = @transform_2, window_bounds = array<i64: 32, 128>}, {pipeline_mode = #tpu.pipeline_mode<synchronous>, transform_indices = @transform_3, window_bounds = array<i64: 1, 128>}, {transform_indices = @transform_4, window_bounds = array<i64: 1, 8, 128>}]} {
    %0 = arith.index_cast %arg0 : i32 to index
    %c0 = arith.constant 0 : index
    %1 = memref.load %arg1[%0, %c0] : memref<4x8xi32, #tpu.memory_space<smem>>
    %2 = arith.index_cast %1 : i32 to index
    %c0_0 = arith.constant 0 : index
    %3 = vector.load %arg2[%2, %c0_0] : memref<20x128xf32, #tpu.memory_space<vmem>>, vector<1x128xf32>
    %4 = arith.index_cast %arg0 : i32 to index
    %c1 = arith.constant 1 : index
    %5 = memref.load %arg1[%4, %c1] : memref<4x8xi32, #tpu.memory_space<smem>>
    %6 = arith.index_cast %5 : i32 to index
    %c0_1 = arith.constant 0 : index
    %7 = vector.load %arg2[%6, %c0_1] : memref<20x128xf32, #tpu.memory_space<vmem>>, vector<1x128xf32>
    %8 = arith.index_cast %arg0 : i32 to index
    %c2 = arith.constant 2 : index
    %9 = memref.load %arg1[%8, %c2] : memref<4x8xi32, #tpu.memory_space<smem>>
    %10 = arith.index_cast %9 : i32 to index
    %c0_2 = arith.constant 0 : index
    %11 = vector.load %arg2[%10, %c0_2] : memref<20x128xf32, #tpu.memory_space<vmem>>, vector<1x128xf32>
    %12 = arith.index_cast %arg0 : i32 to index
    %c3 = arith.constant 3 : index
    %13 = memref.load %arg1[%12, %c3] : memref<4x8xi32, #tpu.memory_space<smem>>
    %14 = arith.index_cast %13 : i32 to index
    %c0_3 = arith.constant 0 : index
    %15 = vector.load %arg2[%14, %c0_3] : memref<20x128xf32, #tpu.memory_space<vmem>>, vector<1x128xf32>
    %16 = arith.index_cast %arg0 : i32 to index
    %c4 = arith.constant 4 : index
    %17 = memref.load %arg1[%16, %c4] : memref<4x8xi32, #tpu.memory_space<smem>>
    %18 = arith.index_cast %17 : i32 to index
    %c0_4 = arith.constant 0 : index
    %19 = vector.load %arg2[%18, %c0_4] : memref<20x128xf32, #tpu.memory_space<vmem>>, vector<1x128xf32>
    %20 = arith.index_cast %arg0 : i32 to index
    %c5 = arith.constant 5 : index
    %21 = memref.load %arg1[%20, %c5] : memref<4x8xi32, #tpu.memory_space<smem>>
    %22 = arith.index_cast %21 : i32 to index
    %c0_5 = arith.constant 0 : index
    %23 = vector.load %arg2[%22, %c0_5] : memref<20x128xf32, #tpu.memory_space<vmem>>, vector<1x128xf32>
    %24 = arith.index_cast %arg0 : i32 to index
    %c6 = arith.constant 6 : index
    %25 = memref.load %arg1[%24, %c6] : memref<4x8xi32, #tpu.memory_space<smem>>
    %26 = arith.index_cast %25 : i32 to index
    %c0_6 = arith.constant 0 : index
    %27 = vector.load %arg2[%26, %c0_6] : memref<20x128xf32, #tpu.memory_space<vmem>>, vector<1x128xf32>
    %28 = arith.index_cast %arg0 : i32 to index
    %c7 = arith.constant 7 : index
    %29 = memref.load %arg1[%28, %c7] : memref<4x8xi32, #tpu.memory_space<smem>>
    %30 = arith.index_cast %29 : i32 to index
    %c0_7 = arith.constant 0 : index
    %31 = vector.load %arg2[%30, %c0_7] : memref<20x128xf32, #tpu.memory_space<vmem>>, vector<1x128xf32>
    %c0_8 = arith.constant 0 : index
    %c0_9 = arith.constant 0 : index
    %32 = vector.load %arg3[%c0_8, %c0_9] : memref<32x128xf32, #tpu.memory_space<vmem>>, vector<32x128xf32>
    %cst = arith.constant 0.000000e+00 : f32
    %33 = vector.broadcast %cst : f32 to vector<1x32xf32>
    %cst_10 = arith.constant 0.000000e+00 : f32
    %34 = vector.broadcast %cst_10 : f32 to vector<1x32xf32>
    %cst_11 = arith.constant dense<0.000000e+00> : vector<1x128xf32>
    %35 = tpu.matmul %33, %32, %cst_11 {dimension_numbers = #tpu.dot_dimension_numbers<[1], [0], [0], [1], [0, 0, 1, 1], [], []>} : vector<1x32xf32>, vector<32x128xf32>, vector<1x128xf32> -> vector<1x128xf32>
    %36 = arith.addf %3, %35 : vector<1x128xf32>
    %37 = arith.negf %36 : vector<1x128xf32>
    %38 = math.exp %37 : vector<1x128xf32>
    %cst_12 = arith.constant 1.000000e+00 : f32
    %39 = vector.broadcast %cst_12 : f32 to vector<1x128xf32>
    %40 = arith.addf %39, %38 : vector<1x128xf32>
    %41 = arith.divf %39, %40 : vector<1x128xf32>
    %42 = math.tanh %36 : vector<1x128xf32>
    %43 = vector.extract_strided_slice %41 {offsets = [0, 0], sizes = [1, 32], strides = [1, 1]} : vector<1x128xf32> to vector<1x32xf32>
    %44 = vector.extract_strided_slice %41 {offsets = [0, 32], sizes = [1, 32], strides = [1, 1]} : vector<1x128xf32> to vector<1x32xf32>
    %45 = vector.extract_strided_slice %42 {offsets = [0, 64], sizes = [1, 32], strides = [1, 1]} : vector<1x128xf32> to vector<1x32xf32>
    %46 = vector.extract_strided_slice %41 {offsets = [0, 96], sizes = [1, 32], strides = [1, 1]} : vector<1x128xf32> to vector<1x32xf32>
    %47 = arith.mulf %44, %34 : vector<1x32xf32>
    %48 = arith.mulf %43, %45 : vector<1x32xf32>
    %49 = arith.addf %47, %48 : vector<1x32xf32>
    %50 = math.tanh %49 : vector<1x32xf32>
    %51 = arith.mulf %46, %50 : vector<1x32xf32>
    %cst_13 = arith.constant dense<0.000000e+00> : vector<1x128xf32>
    %52 = tpu.matmul %51, %32, %cst_13 {dimension_numbers = #tpu.dot_dimension_numbers<[1], [0], [0], [1], [0, 0, 1, 1], [], []>} : vector<1x32xf32>, vector<32x128xf32>, vector<1x128xf32> -> vector<1x128xf32>
    %53 = arith.addf %7, %52 : vector<1x128xf32>
    %54 = arith.negf %53 : vector<1x128xf32>
    %55 = math.exp %54 : vector<1x128xf32>
    %cst_14 = arith.constant 1.000000e+00 : f32
    %56 = vector.broadcast %cst_14 : f32 to vector<1x128xf32>
    %57 = arith.addf %56, %55 : vector<1x128xf32>
    %58 = arith.divf %56, %57 : vector<1x128xf32>
    %59 = math.tanh %53 : vector<1x128xf32>
    %60 = vector.extract_strided_slice %58 {offsets = [0, 0], sizes = [1, 32], strides = [1, 1]} : vector<1x128xf32> to vector<1x32xf32>
    %61 = vector.extract_strided_slice %58 {offsets = [0, 32], sizes = [1, 32], strides = [1, 1]} : vector<1x128xf32> to vector<1x32xf32>
    %62 = vector.extract_strided_slice %59 {offsets = [0, 64], sizes = [1, 32], strides = [1, 1]} : vector<1x128xf32> to vector<1x32xf32>
    %63 = vector.extract_strided_slice %58 {offsets = [0, 96], sizes = [1, 32], strides = [1, 1]} : vector<1x128xf32> to vector<1x32xf32>
    %64 = arith.mulf %61, %49 : vector<1x32xf32>
    %65 = arith.mulf %60, %62 : vector<1x32xf32>
    %66 = arith.addf %64, %65 : vector<1x32xf32>
    %67 = math.tanh %66 : vector<1x32xf32>
    %68 = arith.mulf %63, %67 : vector<1x32xf32>
    %cst_15 = arith.constant dense<0.000000e+00> : vector<1x128xf32>
    %69 = tpu.matmul %68, %32, %cst_15 {dimension_numbers = #tpu.dot_dimension_numbers<[1], [0], [0], [1], [0, 0, 1, 1], [], []>} : vector<1x32xf32>, vector<32x128xf32>, vector<1x128xf32> -> vector<1x128xf32>
    %70 = arith.addf %11, %69 : vector<1x128xf32>
    %71 = arith.negf %70 : vector<1x128xf32>
    %72 = math.exp %71 : vector<1x128xf32>
    %cst_16 = arith.constant 1.000000e+00 : f32
    %73 = vector.broadcast %cst_16 : f32 to vector<1x128xf32>
    %74 = arith.addf %73, %72 : vector<1x128xf32>
    %75 = arith.divf %73, %74 : vector<1x128xf32>
    %76 = math.tanh %70 : vector<1x128xf32>
    %77 = vector.extract_strided_slice %75 {offsets = [0, 0], sizes = [1, 32], strides = [1, 1]} : vector<1x128xf32> to vector<1x32xf32>
    %78 = vector.extract_strided_slice %75 {offsets = [0, 32], sizes = [1, 32], strides = [1, 1]} : vector<1x128xf32> to vector<1x32xf32>
    %79 = vector.extract_strided_slice %76 {offsets = [0, 64], sizes = [1, 32], strides = [1, 1]} : vector<1x128xf32> to vector<1x32xf32>
    %80 = vector.extract_strided_slice %75 {offsets = [0, 96], sizes = [1, 32], strides = [1, 1]} : vector<1x128xf32> to vector<1x32xf32>
    %81 = arith.mulf %78, %66 : vector<1x32xf32>
    %82 = arith.mulf %77, %79 : vector<1x32xf32>
    %83 = arith.addf %81, %82 : vector<1x32xf32>
    %84 = math.tanh %83 : vector<1x32xf32>
    %85 = arith.mulf %80, %84 : vector<1x32xf32>
    %cst_17 = arith.constant dense<0.000000e+00> : vector<1x128xf32>
    %86 = tpu.matmul %85, %32, %cst_17 {dimension_numbers = #tpu.dot_dimension_numbers<[1], [0], [0], [1], [0, 0, 1, 1], [], []>} : vector<1x32xf32>, vector<32x128xf32>, vector<1x128xf32> -> vector<1x128xf32>
    %87 = arith.addf %15, %86 : vector<1x128xf32>
    %88 = arith.negf %87 : vector<1x128xf32>
    %89 = math.exp %88 : vector<1x128xf32>
    %cst_18 = arith.constant 1.000000e+00 : f32
    %90 = vector.broadcast %cst_18 : f32 to vector<1x128xf32>
    %91 = arith.addf %90, %89 : vector<1x128xf32>
    %92 = arith.divf %90, %91 : vector<1x128xf32>
    %93 = math.tanh %87 : vector<1x128xf32>
    %94 = vector.extract_strided_slice %92 {offsets = [0, 0], sizes = [1, 32], strides = [1, 1]} : vector<1x128xf32> to vector<1x32xf32>
    %95 = vector.extract_strided_slice %92 {offsets = [0, 32], sizes = [1, 32], strides = [1, 1]} : vector<1x128xf32> to vector<1x32xf32>
    %96 = vector.extract_strided_slice %93 {offsets = [0, 64], sizes = [1, 32], strides = [1, 1]} : vector<1x128xf32> to vector<1x32xf32>
    %97 = vector.extract_strided_slice %92 {offsets = [0, 96], sizes = [1, 32], strides = [1, 1]} : vector<1x128xf32> to vector<1x32xf32>
    %98 = arith.mulf %95, %83 : vector<1x32xf32>
    %99 = arith.mulf %94, %96 : vector<1x32xf32>
    %100 = arith.addf %98, %99 : vector<1x32xf32>
    %101 = math.tanh %100 : vector<1x32xf32>
    %102 = arith.mulf %97, %101 : vector<1x32xf32>
    %cst_19 = arith.constant dense<0.000000e+00> : vector<1x128xf32>
    %103 = tpu.matmul %102, %32, %cst_19 {dimension_numbers = #tpu.dot_dimension_numbers<[1], [0], [0], [1], [0, 0, 1, 1], [], []>} : vector<1x32xf32>, vector<32x128xf32>, vector<1x128xf32> -> vector<1x128xf32>
    %104 = arith.addf %19, %103 : vector<1x128xf32>
    %105 = arith.negf %104 : vector<1x128xf32>
    %106 = math.exp %105 : vector<1x128xf32>
    %cst_20 = arith.constant 1.000000e+00 : f32
    %107 = vector.broadcast %cst_20 : f32 to vector<1x128xf32>
    %108 = arith.addf %107, %106 : vector<1x128xf32>
    %109 = arith.divf %107, %108 : vector<1x128xf32>
    %110 = math.tanh %104 : vector<1x128xf32>
    %111 = vector.extract_strided_slice %109 {offsets = [0, 0], sizes = [1, 32], strides = [1, 1]} : vector<1x128xf32> to vector<1x32xf32>
    %112 = vector.extract_strided_slice %109 {offsets = [0, 32], sizes = [1, 32], strides = [1, 1]} : vector<1x128xf32> to vector<1x32xf32>
    %113 = vector.extract_strided_slice %110 {offsets = [0, 64], sizes = [1, 32], strides = [1, 1]} : vector<1x128xf32> to vector<1x32xf32>
    %114 = vector.extract_strided_slice %109 {offsets = [0, 96], sizes = [1, 32], strides = [1, 1]} : vector<1x128xf32> to vector<1x32xf32>
    %115 = arith.mulf %112, %100 : vector<1x32xf32>
    %116 = arith.mulf %111, %113 : vector<1x32xf32>
    %117 = arith.addf %115, %116 : vector<1x32xf32>
    %118 = math.tanh %117 : vector<1x32xf32>
    %119 = arith.mulf %114, %118 : vector<1x32xf32>
    %cst_21 = arith.constant dense<0.000000e+00> : vector<1x128xf32>
    %120 = tpu.matmul %119, %32, %cst_21 {dimension_numbers = #tpu.dot_dimension_numbers<[1], [0], [0], [1], [0, 0, 1, 1], [], []>} : vector<1x32xf32>, vector<32x128xf32>, vector<1x128xf32> -> vector<1x128xf32>
    %121 = arith.addf %23, %120 : vector<1x128xf32>
    %122 = arith.negf %121 : vector<1x128xf32>
    %123 = math.exp %122 : vector<1x128xf32>
    %cst_22 = arith.constant 1.000000e+00 : f32
    %124 = vector.broadcast %cst_22 : f32 to vector<1x128xf32>
    %125 = arith.addf %124, %123 : vector<1x128xf32>
    %126 = arith.divf %124, %125 : vector<1x128xf32>
    %127 = math.tanh %121 : vector<1x128xf32>
    %128 = vector.extract_strided_slice %126 {offsets = [0, 0], sizes = [1, 32], strides = [1, 1]} : vector<1x128xf32> to vector<1x32xf32>
    %129 = vector.extract_strided_slice %126 {offsets = [0, 32], sizes = [1, 32], strides = [1, 1]} : vector<1x128xf32> to vector<1x32xf32>
    %130 = vector.extract_strided_slice %127 {offsets = [0, 64], sizes = [1, 32], strides = [1, 1]} : vector<1x128xf32> to vector<1x32xf32>
    %131 = vector.extract_strided_slice %126 {offsets = [0, 96], sizes = [1, 32], strides = [1, 1]} : vector<1x128xf32> to vector<1x32xf32>
    %132 = arith.mulf %129, %117 : vector<1x32xf32>
    %133 = arith.mulf %128, %130 : vector<1x32xf32>
    %134 = arith.addf %132, %133 : vector<1x32xf32>
    %135 = math.tanh %134 : vector<1x32xf32>
    %136 = arith.mulf %131, %135 : vector<1x32xf32>
    %cst_23 = arith.constant dense<0.000000e+00> : vector<1x128xf32>
    %137 = tpu.matmul %136, %32, %cst_23 {dimension_numbers = #tpu.dot_dimension_numbers<[1], [0], [0], [1], [0, 0, 1, 1], [], []>} : vector<1x32xf32>, vector<32x128xf32>, vector<1x128xf32> -> vector<1x128xf32>
    %138 = arith.addf %27, %137 : vector<1x128xf32>
    %139 = arith.negf %138 : vector<1x128xf32>
    %140 = math.exp %139 : vector<1x128xf32>
    %cst_24 = arith.constant 1.000000e+00 : f32
    %141 = vector.broadcast %cst_24 : f32 to vector<1x128xf32>
    %142 = arith.addf %141, %140 : vector<1x128xf32>
    %143 = arith.divf %141, %142 : vector<1x128xf32>
    %144 = math.tanh %138 : vector<1x128xf32>
    %145 = vector.extract_strided_slice %143 {offsets = [0, 0], sizes = [1, 32], strides = [1, 1]} : vector<1x128xf32> to vector<1x32xf32>
    %146 = vector.extract_strided_slice %143 {offsets = [0, 32], sizes = [1, 32], strides = [1, 1]} : vector<1x128xf32> to vector<1x32xf32>
    %147 = vector.extract_strided_slice %144 {offsets = [0, 64], sizes = [1, 32], strides = [1, 1]} : vector<1x128xf32> to vector<1x32xf32>
    %148 = vector.extract_strided_slice %143 {offsets = [0, 96], sizes = [1, 32], strides = [1, 1]} : vector<1x128xf32> to vector<1x32xf32>
    %149 = arith.mulf %146, %134 : vector<1x32xf32>
    %150 = arith.mulf %145, %147 : vector<1x32xf32>
    %151 = arith.addf %149, %150 : vector<1x32xf32>
    %152 = math.tanh %151 : vector<1x32xf32>
    %153 = arith.mulf %148, %152 : vector<1x32xf32>
    %cst_25 = arith.constant dense<0.000000e+00> : vector<1x128xf32>
    %154 = tpu.matmul %153, %32, %cst_25 {dimension_numbers = #tpu.dot_dimension_numbers<[1], [0], [0], [1], [0, 0, 1, 1], [], []>} : vector<1x32xf32>, vector<32x128xf32>, vector<1x128xf32> -> vector<1x128xf32>
    %155 = arith.addf %31, %154 : vector<1x128xf32>
    %156 = arith.negf %155 : vector<1x128xf32>
    %157 = math.exp %156 : vector<1x128xf32>
    %cst_26 = arith.constant 1.000000e+00 : f32
    %158 = vector.broadcast %cst_26 : f32 to vector<1x128xf32>
    %159 = arith.addf %158, %157 : vector<1x128xf32>
    %160 = arith.divf %158, %159 : vector<1x128xf32>
    %161 = math.tanh %155 : vector<1x128xf32>
    %162 = vector.extract_strided_slice %160 {offsets = [0, 0], sizes = [1, 32], strides = [1, 1]} : vector<1x128xf32> to vector<1x32xf32>
    %163 = vector.extract_strided_slice %160 {offsets = [0, 32], sizes = [1, 32], strides = [1, 1]} : vector<1x128xf32> to vector<1x32xf32>
    %164 = vector.extract_strided_slice %161 {offsets = [0, 64], sizes = [1, 32], strides = [1, 1]} : vector<1x128xf32> to vector<1x32xf32>
    %165 = vector.extract_strided_slice %160 {offsets = [0, 96], sizes = [1, 32], strides = [1, 1]} : vector<1x128xf32> to vector<1x32xf32>
    %166 = arith.mulf %163, %151 : vector<1x32xf32>
    %167 = arith.mulf %162, %164 : vector<1x32xf32>
    %168 = arith.addf %166, %167 : vector<1x32xf32>
    %169 = math.tanh %168 : vector<1x32xf32>
    %170 = arith.mulf %165, %169 : vector<1x32xf32>
    %171 = tpu.concatenate %51, %68, %85, %102, %119, %136, %153, %170 in 0 : vector<1x32xf32>, vector<1x32xf32>, vector<1x32xf32>, vector<1x32xf32>, vector<1x32xf32>, vector<1x32xf32>, vector<1x32xf32>, vector<1x32xf32> -> vector<8x32xf32>
    %c0_27 = arith.constant 0 : index
    %c0_28 = arith.constant 0 : index
    %172 = vector.load %arg4[%c0_27, %c0_28] : memref<32x128xf32, #tpu.memory_space<vmem>>, vector<32x128xf32>
    %cst_29 = arith.constant dense<0.000000e+00> : vector<8x128xf32>
    %173 = tpu.matmul %171, %172, %cst_29 {dimension_numbers = #tpu.dot_dimension_numbers<[1], [0], [0], [1], [0, 0, 1, 1], [], []>} : vector<8x32xf32>, vector<32x128xf32>, vector<8x128xf32> -> vector<8x128xf32>
    %c0_30 = arith.constant 0 : index
    %c0_31 = arith.constant 0 : index
    %174 = vector.load %arg5[%c0_30, %c0_31] : memref<1x128xf32, #tpu.memory_space<vmem>>, vector<1x128xf32>
    %175 = vector.broadcast %174 : vector<1x128xf32> to vector<8x128xf32>
    %176 = arith.addf %173, %175 : vector<8x128xf32>
    %cst_32 = arith.constant dense<0xFF800000> : vector<8xf32>
    %177 = vector.multi_reduction <maximumf>, %176, %cst_32 [1] : vector<8x128xf32> to vector<8xf32>
    %178 = vector.shape_cast %177 : vector<8xf32> to vector<8x1xf32>
    %179 = vector.broadcast %178 : vector<8x1xf32> to vector<8x128xf32>
    %180 = arith.subf %176, %179 : vector<8x128xf32>
    %181 = math.exp %180 : vector<8x128xf32>
    %cst_33 = arith.constant dense<0.000000e+00> : vector<8xf32>
    %182 = vector.multi_reduction <add>, %181, %cst_33 [1] : vector<8x128xf32> to vector<8xf32>
    %183 = vector.shape_cast %182 : vector<8xf32> to vector<8x1xf32>
    %184 = math.log %183 : vector<8x1xf32>
    %185 = arith.addf %184, %178 : vector<8x1xf32>
    %186 = vector.broadcast %185 : vector<8x1xf32> to vector<8x128xf32>
    %187 = arith.subf %176, %186 : vector<8x128xf32>
    %c0_34 = arith.constant 0 : index
    %c0_35 = arith.constant 0 : index
    %c0_36 = arith.constant 0 : index
    %188 = vector.load %arg6[%c0_34, %c0_35, %c0_36] : memref<1x8x128xf32, #tpu.memory_space<vmem>>, vector<1x8x128xf32>
    %189 = vector.shape_cast %188 : vector<1x8x128xf32> to vector<8x128xf32>
    %190 = vector.shape_cast %187 : vector<8x128xf32> to vector<1x8x128xf32>
    tpu.vector_store %arg6[%c0_34, %c0_35, %c0_36], %190 {strides = array<i32>} : memref<1x8x128xf32, #tpu.memory_space<vmem>>, vector<1x8x128xf32>,
    return
  }
  func.func @transform_0(%arg0: i32, %arg1: memref<4x8xi32, #tpu.memory_space<smem>>) -> (i32, i32) {
    %c0_i32 = arith.constant 0 : i32
    %c0_i32_0 = arith.constant 0 : i32
    %c0_i32_1 = arith.constant 0 : i32
    return %c0_i32, %c0_i32_0 : i32, i32
  }
  func.func @transform_1(%arg0: i32, %arg1: memref<4x8xi32, #tpu.memory_space<smem>>) -> (i32, i32) {
    %c0_i32 = arith.constant 0 : i32
    %c0_i32_0 = arith.constant 0 : i32
    %c0_i32_1 = arith.constant 0 : i32
    return %c0_i32, %c0_i32_0 : i32, i32
  }
  func.func @transform_2(%arg0: i32, %arg1: memref<4x8xi32, #tpu.memory_space<smem>>) -> (i32, i32) {
    %c0_i32 = arith.constant 0 : i32
    %c0_i32_0 = arith.constant 0 : i32
    %c0_i32_1 = arith.constant 0 : i32
    return %c0_i32, %c0_i32_0 : i32, i32
  }
  func.func @transform_3(%arg0: i32, %arg1: memref<4x8xi32, #tpu.memory_space<smem>>) -> (i32, i32) {
    %c0_i32 = arith.constant 0 : i32
    %c0_i32_0 = arith.constant 0 : i32
    %c0_i32_1 = arith.constant 0 : i32
    return %c0_i32, %c0_i32_0 : i32, i32
  }
  func.func @transform_4(%arg0: i32, %arg1: memref<4x8xi32, #tpu.memory_space<smem>>) -> (i32, i32, i32) {
    %c0_i32 = arith.constant 0 : i32
    %c0_i32_0 = arith.constant 0 : i32
    %c0_i32_1 = arith.constant 0 : i32
    return %arg0, %c0_i32, %c0_i32_0 : i32, i32, i32
  }
}

</mosaic_0001>

<bundles_post_ra>
// kernel: tpu_custom_call.1
= control target key start
LH: loop header
LB: loop body
LE: loop exit
PB: predicated region body
PF: predicated region fallthrough
CT: control target
= control target key end

     0   :  { %s2204_s0 = inlined_call_operand.hbm [shape: s32[4,8], index: 0, kind: input, shape index: {}]   ;;  %s2205_s1 = inlined_call_operand.hbm [shape: f32[20,128], index: 1, kind: input, shape index: {}]   ;;  %s2206_s2 = inlined_call_operand.hbm [shape: f32[32,128], index: 2, kind: input, shape index: {}]   ;;  %s2207_s3 = inlined_call_operand.hbm [shape: f32[32,128], index: 3, kind: input, shape index: {}]   ;;  %s2208_s4 = inlined_call_operand.vmem [shape: f32[1,128], index: 4, kind: input, shape index: {}]   ;;  %s2209_s5 = inlined_call_operand.hbm [shape: f32[4,8,128], index: 5, kind: output, shape index: {}]  }
   0x1   :  { %s1663_s20 = scalar_lea.hbm %s2204_s0, 64 }
   0x2   :  { %p1664_p0 = scmp.ne.s32.totalorder %s2204_s0, %s1663_s20  ;;  %p1667_p1 = scmp.lt.u32.totalorder %s1663_s20, %s2204_s0 }
   0x4   :  { %p1669_p2 = pnand %p1667_p1, %p1664_p0 }
   0x6   :  { %1672 = shalt.err (!%p1669_p2)  }
   0x7   :  { %s1831_s25 = smov [#allocation3]  }
   0x8   :  { %11 = dma.hbm_to_smem %s2204_s0, 64, %s1831_s25, [#allocation2] }
   0x9   :  { %1801 = dma.done.wait [#allocation2], 64 }
   0xa   :  { %1802 = vsyncadd [#allocation2], 4294967232 }
   0xb   :  { %13 = sfence }
   0xc   :  { %14 = vsyncpa [#allocation5], 0 }
   0xd   :  { %15 = vsyncpa [#allocation8], 0 }
   0xe   :  { %16 = vsyncpa [#allocation6], 0 }
   0xf   :  { %18 = vsyncpa [#allocation6 + $0x1], 0  ;;  %s1885_s28 = smov 0   ;;  %s1887_s29 = smov 0  }
  0x10   :  { %s1889_s30 = smov 0   ;;  %s1891_s6 = smov 0  }
  0x11 LB: > { %s1906_s0 = sadd.s32 4294967295, %s1829_s6   ;;  %s1287_s7 = sadd.s32 4294967294, %s1829_s6   ;;  %s1829_s6 = sphi %s1891_s6, %s2228_s6   ;;  %s1825_s30 = sphi %s1889_s30, %s2227_s30   ;;  %s1821_s29 = sphi %s1887_s29, %s2226_s29   ;;  %s1817_s28 = sphi %s1885_s28, %s2225_s28  }
  0x12   : > { %s1910_s8 = sadd.s32 1, %s1829_s6   ;;  %s115_s9 = sadd.s32 1, %s1825_s30 }
  0x13   : > { %s112_s10 = ssub.s32 %s1829_s6, %s1910_s8  ;;  %p125_p3 = scmp.ne.s32.totalorder %s1825_s30, %s1821_s29 }
  0x14   : > { %p113_p4 = scmp.eq.s32.totalorder %s112_s10, 0  ;;  %p126_p5 = scmp.eq.s32.totalorder %s1906_s0, 3 }
  0x15   : > { %p131_p6 = scmp.ne.s32.totalorder %s1821_s29, %s1817_s28  ;;  %p132_p7 = scmp.eq.s32.totalorder %s1287_s7, 3 }
  0x16   : > { %s1921_s11 = scalar_select %p113_p4, %s1825_s30, %s115_s9  }
  0x17   : > { %p1923_p8 = por %p126_p5, %p125_p3  ;;  %p1927_p9 = por %p132_p7, %p131_p6 }
  0x18   : > { %p1288_p10 = scmp.ge.s32.totalorder %s1829_s6, 1  ;;  %p139_p11 = scmp.lt.s32.totalorder %s1829_s6, 5 }
  0x19   : > { %s2213_s12 = scalar_select %p1923_p8, 1, 0 }
  0x1a   : > { %s2214_s13 = scalar_select %p1927_p9, 1, 0 }
  0x1b   : > { %p2210_p12 = scmp.eq.s32.totalorder %s1906_s0, 0  ;;  %p1934_p13 = pnand %p1288_p10, %p139_p11 }
  0x1c   : > { %s1832_s15 = smov [#allocation7]   ;;  %s1833_s18 = smov [#allocation4]  }
  0x1d   : > { %s2215_s14 = scalar_select %p1934_p13, 1, 0 }
  0x1e   : > { %p1531_p0 = pneg %p1934_p13  ;;  %s164_s16 = sshll.u32 %s1832_s15, 4  ;;  %s1940_s16 = int_to_ptr.vmem [resolvable:$true] %s164_s16 }
  0x1f   : > { %s151_s19 = sshll.u32 %s1833_s18, 4  ;;  %s1834_s20 = smov [#allocation9]   ;;  %s1948_s19 = int_to_ptr.vmem [resolvable:$true] %s151_s19 }
  0x20   : > { %p1944_p1 = pnand %p2210_p12, %p1531_p0  ;;  %s1950_s21 = sshll.u32 %s1834_s20, 4  ;;  %s178_s21 = int_to_ptr.vmem [resolvable:$true] %s1950_s21 }
  0x21   : > { %s1673_s24 = scalar_lea.hbm %s2206_s2, 512 }
  0x22   : > { %p1674_p2 = scmp.ne.s32.totalorder %s2206_s2, %s1673_s24  ;;  %p1960_p3 = pneg %p1944_p1 }
  0x23   : > { %p1680_p6 = scmp.lt.u32.totalorder %s1673_s24, %s2206_s2 }
  0x24   : > { %p1676_p4 = pnand %p1960_p3, %p1674_p2 }
  0x26   : > { %p1677_p5 = pneg %p1676_p4 }
  0x28   : > { %p1682_p7 = pnand %p1680_p6, %p1677_p5 }
  0x2a   : > { %1685 = shalt.err (!%p1682_p7)
}
  0x2b   : > { %s1686_s10 = scalar_lea.vmem %s1940_s16, 512  ;;  %p1694_p12 = scmp.lt.s32.totalorder %s1940_s16, %s1940_s16 }
  0x2c   : > { %p1687_p10 = scmp.ne.s32.totalorder %s1940_s16, %s1686_s10  ;;  %p1695_p9 = scmp.lt.s32.totalorder %s1686_s10, %s1686_s10 }
  0x2e   : > { %p1689_p11 = pnand %p1687_p10, %p1960_p3  ;;  %p1696_p2 = por %p1695_p9, %p1694_p12 }
  0x30   : > { %p1690_p0 = pneg %p1689_p11 }
  0x32   : > { %p1697_p4 = pnand %p1696_p2, %p1690_p0 }
  0x34   : > { %1700 = shalt.err (!%p1697_p4)
}
  0x35   : > { %s1835_s15 = smov 128   ;;  %s1836_s18 = smov 8  }
  0x36   : > { %1537 = dma.hbm_to_vmem [thread:$0]  (!%p1944_p1), %s2206_s2, 512, %s1940_s16, [#allocation8], %s1835_s15, %s1835_s15, %s1836_s18  }
  0x37   : > { %s1701_s25 = scalar_lea.hbm %s2205_s1, 384 }
  0x38   : > { %p1702_p9 = scmp.ne.s32.totalorder %s2205_s1, %s1701_s25  ;;  %p1708_p6 = scmp.lt.u32.totalorder %s1701_s25, %s2205_s1 }
  0x3a   : > { %p1704_p12 = pnand %p1702_p9, %p1960_p3 }
  0x3c   : > { %p1705_p5 = pneg %p1704_p12 }
  0x3e   : > { %p1710_p7 = pnand %p1708_p6, %p1705_p5 }
  0x40   : > { %1713 = shalt.err (!%p1710_p7)
}
  0x41   : > { %s1714_s16 = scalar_lea.vmem %s1948_s19, 384  ;;  %p1722_p2 = scmp.lt.s32.totalorder %s1948_s19, %s1948_s19 }
  0x42   : > { %p1715_p10 = scmp.ne.s32.totalorder %s1948_s19, %s1714_s16  ;;  %p1723_p4 = scmp.lt.s32.totalorder %s1714_s16, %s1714_s16 }
  0x44   : > { %p1717_p11 = pnand %p1715_p10, %p1960_p3  ;;  %p1724_p9 = por %p1723_p4, %p1722_p2 }
  0x46   : > { %p1718_p0 = pneg %p1717_p11 }
  0x48   : > { %p1725_p12 = pnand %p1724_p9, %p1718_p0 }
  0x4a   : > { %1728 = shalt.err (!%p1725_p12)
}
  0x4b   : > { %1534 = dma.hbm_to_vmem [thread:$0]  (!%p1944_p1), %s2205_s1, 384, %s1948_s19, [#allocation5], %s1835_s15, %s1835_s15, %s1836_s18  }
  0x4c   : > { %s1729_s25 = scalar_lea.hbm %s2207_s3, 512 }
  0x4d   : > { %p1730_p5 = scmp.ne.s32.totalorder %s2207_s3, %s1729_s25  ;;  %p1736_p10 = scmp.lt.u32.totalorder %s1729_s25, %s2207_s3 }
  0x4f   : > { %p1732_p6 = pnand %p1730_p5, %p1960_p3 }
  0x51   : > { %p1733_p7 = pneg %p1732_p6 }
  0x53   : > { %p1738_p11 = pnand %p1736_p10, %p1733_p7 }
  0x55   : > { %1741 = shalt.err (!%p1738_p11)
}
  0x56   : > { %s1742_s16 = scalar_lea.vmem %s178_s21, 512  ;;  %p1750_p9 = scmp.lt.s32.totalorder %s178_s21, %s178_s21 }
  0x57   : > { %p1743_p0 = scmp.ne.s32.totalorder %s178_s21, %s1742_s16  ;;  %p1751_p12 = scmp.lt.s32.totalorder %s1742_s16, %s1742_s16 }
  0x59   : > { %p1745_p2 = pnand %p1743_p0, %p1960_p3  ;;  %p1752_p8 = por %p1751_p12, %p1750_p9 }
  0x5b   : > { %p1746_p4 = pneg %p1745_p2 }
  0x5d   : > { %p1753_p13 = pnand %p1752_p8, %p1746_p4 }
  0x5f   : > { %1756 = shalt.err (!%p1753_p13)
}
  0x60   : > { %1540 = dma.hbm_to_vmem [thread:$0]  (!%p1944_p1), %s2207_s3, 512, %s178_s21, [#allocation8], %s1835_s15, %s1835_s15, %s1836_s18  }
  0x61   : > { %p2218_p5 = scmp.ne.s32.totalorder %s2215_s14, 0 }
  0x62   : > { %p2219_p3 = scmp.eq.s32.totalorder (!%p2218_p5), %s1906_s0, 0 }
  0x63   : > { %196 = sbr.rel (%p2218_p5) target bundleno = 6283 (0x188b), region = 36 }
  0x6a   : > { %1804 = dma.done.wait (%p2219_p3), [#allocation5], 384   ;;  %p2220_p6 = pmov %p2219_p3 }
  0x6b   : > { %p2221_p8 = pmov %p2219_p3 }
  0x6c   : > { %1806 = vsyncadd (%p2220_p6), [#allocation5], 4294966912 }
  0x6d   : > { %1808 = dma.done.wait (%p2221_p8), [#allocation8], 1024   ;;  %p2222_p13 = pmov %p2219_p3 }
  0x6e   : > { %v1837_v0 = vmov 0.0|0.0   ;;  %vm1838_vm0 = vmmov 0   ;;  %v1839_v1 = vmov 0.0   ;;  %v257_v2 = vld [vmem:[#allocation7] sm:$0xff]  ;;  %v258_v3 = vld [vmem:[#allocation7 + $0x8] sm:$0xff]  ;;  %v259_v4 = vld [vmem:[#allocation7 + $0x10] sm:$0xff] }
  0x6f   : > { %1810 = vsyncadd (%p2222_p13), [#allocation8], 4294966272  ;;  %1463 = vmatprep.subr.bf16.mxu0 %v1837_v0  ;;  %1372 = vmatprep.mubr.msk.f32.mxu0 %vm1838_vm0, %v1839_v1  ;;  %v2048_v5 = vpack.c.bf16 %v258_v3, %v257_v2  ;;  %v260_v6 = vld [vmem:[#allocation7 + $0x18] sm:$0xff]  ;;  %s2068_s14 = sshll.u32 %s1906_s0, 7  ;;  %s1840_s27 = smov 64   ;;  %vm261_vm1 = vcmask 261120  }
  0x70   : > { %1469 = vmatprep.subr.bf16.mxu1 %v1837_v0  ;;  %1383 = vmatprep.mubr.msk.f32.mxu1 %vm1838_vm0, %v1839_v1  ;;  %v2051_v7 = vpack.c.bf16 %v260_v6, %v259_v4  ;;  %s226_s17 = sld [smem:[#allocation3 + %s2068_s14]]  ;;  %s1841_s0 = smov 32   ;;  %vm1075_vm2 = vcmask 1040384   ;;  %vm1077_vm3 = vcmask 1041408   ;;  %vm1079_vm4 = vcmask 1042432  }
  0x71   : > { %1465 = vmatpush3.bf16.msra.mxu0 %v2048_v5  ;;  %1471 = vmatpush3.bf16.msra.mxu1 %v2048_v5  ;;  %s229_s15 = sadd.s32 1, %s2068_s14  ;;  %s233_s23 = sadd.s32 2, %s2068_s14  ;;  %vm1081_vm5 = vcmask 1043456   ;;  %vm1083_vm6 = vcmask 1044480   ;;  %vm1085_vm7 = vcmask 1045504   ;;  %vm1087_vm8 = vcmask 1046528  }
  0x72   : > { %1466 = vmatprep.subr.bf16.mxu0 %v1837_v0  ;;  %1472 = vmatprep.subr.bf16.mxu1 %v1837_v0  ;;  %s230_s18 = sld [smem:[#allocation3 + %s229_s15]]  ;;  %s237_s26 = sadd.s32 3, %s2068_s14 }
  0x73   : > { %s234_s24 = sld [smem:[#allocation3 + %s233_s23]]  ;;  %s241_s10 = sadd.s32 4, %s2068_s14 }
  0x74   : > { %s238_s7 = sld [smem:[#allocation3 + %s237_s26]]  ;;  %s245_s20 = sadd.s32 5, %s2068_s14 }
  0x75   : > { %1468 = vmatpush3.bf16.msra.mxu0 %v2051_v7  ;;  %1474 = vmatpush3.bf16.msra.mxu1 %v2051_v7  ;;  %s242_s16 = sld [smem:[#allocation3 + %s241_s10]]  ;;  %s249_s15 = sadd.s32 6, %s2068_s14 }
  0x76   : > { %1475 = vmatprep.subr.bf16.mxu0 %v1837_v0  ;;  %1481 = vmatprep.subr.bf16.mxu1 %v1837_v0  ;;  %s227_s21 = scalar_lea.vmem [#allocation4], %s226_s17  ;;  %s246_s17 = sld [smem:[#allocation3 + %s245_s20]] }
  0x77   : > { %v228_v8 = vld [vmem:[%s227_s21] sm:$0x1]  ;;  %s253_s23 = sadd.s32 7, %s2068_s14  ;;  %s2162_s20 = scalar_lea.hbm %s2209_s5, %s2068_s14 }
  0x78   : > { %1373 = vmatmul.mubr.f32.vlgmr.msra.gmra.mrb[0].mxu0 %v1839_v1  ;;  %s231_s22 = scalar_lea.vmem [#allocation4], %s230_s18  ;;  %s250_s18 = sld [smem:[#allocation3 + %s249_s15]] }
  0x79   : > { %1477 = vmatpush3.bf16.msra.mxu0 %v2048_v5  ;;  %1394 = vmatprep.mubr.msk.f32.mxu0 %vm1838_vm0, %v1839_v1  ;;  %v232_v26 = vld [vmem:[%s231_s22] sm:$0x1]  ;;  %s235_s25 = scalar_lea.vmem [#allocation4], %s234_s24  ;;  %s254_s24 = sld [smem:[#allocation3 + %s253_s23]] }
  0x7a   : > { %1478 = vmatprep.subr.bf16.mxu0 %v1837_v0  ;;  %v236_v44 = vld [vmem:[%s235_s25] sm:$0x1]  ;;  %s239_s9 = scalar_lea.vmem [#allocation4], %s238_s7  ;;  %p2223_p7 = scmp.ne.s32.totalorder %s2213_s12, 0 }
  0x7b   : > { %v240_v4 = vld [vmem:[%s239_s9] sm:$0x1]  ;;  %s243_s19 = scalar_lea.vmem [#allocation4], %s242_s16  ;;  %s1842_s15 = smov [#allocation10]  }
  0x7c   : > { %s247_s21 = scalar_lea.vmem [#allocation4], %s246_s17 }
  0x7d   : > { %1480 = vmatpush3.bf16.msra.mxu0 %v2051_v7 }
  0x7e   : > { %1487 = vmatprep.subr.bf16.mxu0 %v1837_v0  ;;  %s251_s22 = scalar_lea.vmem [#allocation4], %s250_s18  ;;  %s1761_s18 = sshll.u32 %s1842_s15, 4  ;;  %s1762_s18 = int_to_ptr.vmem [resolvable:$false] %s1761_s18 }
  0x7f   : > { %s255_s25 = scalar_lea.vmem [#allocation4], %s254_s24 }
 0x14b   : > { %v331_v9 = vpop.f32.mrb[0].mxu0 }
 0x14c   : > { %v335_v10 = vadd.f32 %v331_v9, %v228_v8  ;;  %v1374_v11 = vpop.f32.mrb[1].mxu0 }
 0x14e   : > { %1595 = vtanh.f32 %v335_v10  ;;  %v1298_v13 = vmul.f32 -1.442695, %v335_v10 }
 0x150   : > { %1597 = vpow2.f32 %v1298_v13 }
 0x158   : > { %v1596_v12 = vpop.eup %1595 }
 0x159   : > { %345 = vrot.lane.b32.xlu0 %v1596_v12, %s1840_s27 }
 0x15a   : > { %v1598_v14 = vpop.eup %1597 }
 0x15b   : > { %v339_v15 = vadd.f32 1.0, %v1598_v14 }
 0x15d   : > { %1599 = vrcp.f32 %v339_v15 }
 0x167   : > { %v1600_v16 = vpop.eup %1599 }
 0x168   : > { %v343_v19 = vmul.f32 0.0, %v1600_v16 }
 0x1cb   : > { %v346_v17 = vpop.permute.xlu0 %345 }
 0x1cc   : > { %v348_v18 = vmul.f32 %v1600_v16, %v346_v17 }
 0x1ce   : > { %350 = vrot.lane.b32.xlu0 %v348_v18, %s1841_s0 }
 0x240   : > { %v351_v20 = vpop.permute.xlu0 %350 }
 0x241   : > { %v353_v21 = vadd.f32 %v351_v20, %v343_v19 }
 0x243   : > { %1601 = vtanh.f32 %v353_v21 }
 0x24d   : > { %v1602_v22 = vpop.eup %1601 }
 0x24e   : > { %356 = vrot.lane.b32.xlu1 %v1602_v22, %s1840_s27 }
 0x2c0   : > { %v357_v23 = vpop.permute.xlu1 %356 }
 0x2c1   : > { %v2074_v24 = vmul.f32 %v1600_v16, %v357_v23 }
 0x2c3   : > { %361 = vrot.lane.b32.xlu1 %v2074_v24, %s1841_s0 }
 0x335   : > { %v362_v25 = vpop.permute.xlu1 %361 }
 0x336   : > { %1384 = vmatmul.mubr.msk.f32.vlgmr.msra.gmra.mrb[0].mxu1 %vm261_vm1, %v362_v25 }
 0x337   : > { %1483 = vmatpush3.bf16.msra.mxu1 %v2048_v5  ;;  %1405 = vmatprep.mubr.msk.f32.mxu1 %vm1838_vm0, %v1839_v1 }
 0x338   : > { %1484 = vmatprep.subr.bf16.mxu1 %v1837_v0 }
 0x33b   : > { %1486 = vmatpush3.bf16.msra.mxu1 %v2051_v7 }
 0x33c   : > { %1493 = vmatprep.subr.bf16.mxu1 %v1837_v0 }
 0x409   : > { %v431_v27 = vpop.f32.mrb[0].mxu1 }
 0x40a   : > { %v435_v28 = vadd.f32 %v431_v27, %v232_v26  ;;  %v1385_v29 = vpop.f32.mrb[1].mxu1  ;;  %v244_v26 = vld [vmem:[%s243_s19] sm:$0x1] }
 0x40c   : > { %1603 = vtanh.f32 %v435_v28  ;;  %v1300_v31 = vmul.f32 -1.442695, %v435_v28 }
 0x40e   : > { %1605 = vpow2.f32 %v1300_v31 }
 0x416   : > { %v1604_v30 = vpop.eup %1603 }
 0x417   : > { %445 = vrot.lane.b32.xlu0 %v1604_v30, %s1840_s27 }
 0x418   : > { %v1606_v32 = vpop.eup %1605 }
 0x419   : > { %v439_v33 = vadd.f32 1.0, %v1606_v32 }
 0x41b   : > { %1607 = vrcp.f32 %v439_v33 }
 0x425   : > { %v1608_v34 = vpop.eup %1607 }
 0x426   : > { %v443_v37 = vmul.f32 %v1608_v34, %v353_v21 }
 0x489   : > { %v446_v35 = vpop.permute.xlu0 %445 }
 0x48a   : > { %v448_v36 = vmul.f32 %v1608_v34, %v446_v35 }
 0x48c   : > { %450 = vrot.lane.b32.xlu1 %v448_v36, %s1841_s0 }
 0x4fe   : > { %v451_v38 = vpop.permute.xlu1 %450 }
 0x4ff   : > { %v453_v39 = vadd.f32 %v451_v38, %v443_v37 }
 0x501   : > { %1609 = vtanh.f32 %v453_v39 }
 0x50b   : > { %v1610_v40 = vpop.eup %1609 }
 0x50c   : > { %456 = vrot.lane.b32.xlu0 %v1610_v40, %s1840_s27 }
 0x57e   : > { %v457_v41 = vpop.permute.xlu0 %456 }
 0x57f   : > { %v459_v42 = vmul.f32 %v1608_v34, %v457_v41 }
 0x581   : > { %461 = vrot.lane.b32.xlu1 %v459_v42, %s1841_s0  ;;  %v1060_v59 = vrot.slane %v459_v42, 7 }
 0x583   : > { %v1076_v63 = vsel %vm1075_vm2, %v2074_v24, %v1060_v59 }
 0x5f3   : > { %v462_v43 = vpop.permute.xlu1 %461 }
 0x5f4   : > { %1395 = vmatmul.mubr.msk.f32.vlgmr.msra.gmra.mrb[2].mxu0 %vm261_vm1, %v462_v43 }
 0x5f5   : > { %1489 = vmatpush3.bf16.msra.mxu0 %v2048_v5  ;;  %1416 = vmatprep.mubr.msk.f32.mxu0 %vm1838_vm0, %v1839_v1 }
 0x5f6   : > { %1490 = vmatprep.subr.bf16.mxu0 %v1837_v0 }
 0x5f9   : > { %1492 = vmatpush3.bf16.msra.mxu0 %v2051_v7 }
 0x5fa   : > { %1499 = vmatprep.subr.bf16.mxu0 %v1837_v0 }
 0x6c7   : > { %v531_v45 = vpop.f32.mrb[2].mxu0 }
 0x6c8   : > { %v535_v46 = vadd.f32 %v531_v45, %v236_v44  ;;  %v1396_v47 = vpop.f32.mrb[3].mxu0 }
 0x6ca   : > { %1611 = vtanh.f32 %v535_v46  ;;  %v1302_v49 = vmul.f32 -1.442695, %v535_v46  ;;  %v248_v46 = vld [vmem:[%s247_s21] sm:$0x1] }
 0x6cc   : > { %1613 = vpow2.f32 %v1302_v49 }
 0x6d4   : > { %v1612_v48 = vpop.eup %1611 }
 0x6d5   : > { %545 = vrot.lane.b32.xlu0 %v1612_v48, %s1840_s27 }
 0x6d6   : > { %v1614_v50 = vpop.eup %1613 }
 0x6d7   : > { %v539_v51 = vadd.f32 1.0, %v1614_v50 }
 0x6d9   : > { %1615 = vrcp.f32 %v539_v51 }
 0x6e3   : > { %v1616_v52 = vpop.eup %1615 }
 0x6e4   : > { %v543_v55 = vmul.f32 %v1616_v52, %v453_v39 }
 0x747   : > { %v546_v53 = vpop.permute.xlu0 %545 }
 0x748   : > { %v548_v54 = vmul.f32 %v1616_v52, %v546_v53 }
 0x74a   : > { %550 = vrot.lane.b32.xlu1 %v548_v54, %s1841_s0 }
 0x7bc   : > { %v551_v56 = vpop.permute.xlu1 %550 }
 0x7bd   : > { %v553_v57 = vadd.f32 %v551_v56, %v543_v55 }
 0x7bf   : > { %1617 = vtanh.f32 %v553_v57 }
 0x7c9   : > { %v1618_v58 = vpop.eup %1617 }
 0x7ca   : > { %556 = vrot.lane.b32.xlu0 %v1618_v58, %s1840_s27 }
 0x83c   : > { %v557_v60 = vpop.permute.xlu0 %556 }
 0x83d   : > { %v559_v61 = vmul.f32 %v1616_v52, %v557_v60 }
 0x83f   : > { %v1062_v62 = vrot.slane %v559_v61, 6  ;;  %561 = vrot.lane.b32.xlu1 %v559_v61, %s1841_s0 }
 0x841   : > { %v1078_v2 = vsel %vm1077_vm3, %v1076_v63, %v1062_v62 }
 0x8b1   : > { %v562_v3 = vpop.permute.xlu1 %561 }
 0x8b2   : > { %1406 = vmatmul.mubr.msk.f32.vlgmr.msra.gmra.mrb[2].mxu1 %vm261_vm1, %v562_v3 }
 0x8b3   : > { %1495 = vmatpush3.bf16.msra.mxu1 %v2048_v5  ;;  %1427 = vmatprep.mubr.msk.f32.mxu1 %vm1838_vm0, %v1839_v1 }
 0x8b4   : > { %1496 = vmatprep.subr.bf16.mxu1 %v1837_v0 }
 0x8b7   : > { %1498 = vmatpush3.bf16.msra.mxu1 %v2051_v7 }
 0x8b8   : > { %1505 = vmatprep.subr.bf16.mxu1 %v1837_v0 }
 0x985   : > { %v631_v6 = vpop.f32.mrb[2].mxu1 }
 0x986   : > { %v635_v8 = vadd.f32 %v631_v6, %v240_v4  ;;  %v1407_v9 = vpop.f32.mrb[3].mxu1 }
 0x988   : > { %1619 = vtanh.f32 %v635_v8  ;;  %v1304_v11 = vmul.f32 -1.442695, %v635_v8 }
 0x98a   : > { %1621 = vpow2.f32 %v1304_v11 }
 0x992   : > { %v1620_v10 = vpop.eup %1619 }
 0x993   : > { %645 = vrot.lane.b32.xlu0 %v1620_v10, %s1840_s27 }
 0x994   : > { %v1622_v12 = vpop.eup %1621 }
 0x995   : > { %v639_v13 = vadd.f32 1.0, %v1622_v12 }
 0x997   : > { %1623 = vrcp.f32 %v639_v13 }
 0x9a1   : > { %v1624_v14 = vpop.eup %1623 }
 0x9a2   : > { %v643_v17 = vmul.f32 %v1624_v14, %v553_v57 }
 0xa05   : > { %v646_v15 = vpop.permute.xlu0 %645 }
 0xa06   : > { %v648_v16 = vmul.f32 %v1624_v14, %v646_v15 }
 0xa08   : > { %650 = vrot.lane.b32.xlu1 %v648_v16, %s1841_s0 }
 0xa7a   : > { %v651_v18 = vpop.permute.xlu1 %650 }
 0xa7b   : > { %v653_v19 = vadd.f32 %v651_v18, %v643_v17 }
 0xa7d   : > { %1625 = vtanh.f32 %v653_v19 }
 0xa87   : > { %v1626_v20 = vpop.eup %1625 }
 0xa88   : > { %656 = vrot.lane.b32.xlu0 %v1626_v20, %s1840_s27 }
 0xafa   : > { %v657_v21 = vpop.permute.xlu0 %656 }
 0xafb   : > { %v659_v22 = vmul.f32 %v1624_v14, %v657_v21 }
 0xafd   : > { %v1064_v23 = vrot.slane %v659_v22, 5  ;;  %661 = vrot.lane.b32.xlu1 %v659_v22, %s1841_s0 }
 0xaff   : > { %v1080_v24 = vsel %vm1079_vm4, %v1078_v2, %v1064_v23  ;;  %v252_v2 = vld [vmem:[%s251_s22] sm:$0x1]  ;;  %s1763_s22 = scalar_lea.vmem %s1762_s18, 256 }
 0xb00   : > { %v256_v23 = vld [vmem:[%s255_s25] sm:$0x1] }
 0xb6f   : > { %v662_v25 = vpop.permute.xlu1 %661 }
 0xb70   : > { %1417 = vmatmul.mubr.msk.f32.vlgmr.msra.gmra.mrb[4].mxu0 %vm261_vm1, %v662_v25 }
 0xb71   : > { %1501 = vmatpush3.bf16.msra.mxu0 %v2048_v5  ;;  %1438 = vmatprep.mubr.msk.f32.mxu0 %vm1838_vm0, %v1839_v1 }
 0xb72   : > { %1502 = vmatprep.subr.bf16.mxu0 %v1837_v0 }
 0xb75   : > { %1504 = vmatpush3.bf16.msra.mxu0 %v2051_v7 }
 0xb76   : > { %1511 = vmatprep.subr.bf16.mxu0 %v1837_v0 }
 0xc43   : > { %v731_v27 = vpop.f32.mrb[4].mxu0 }
 0xc44   : > { %v735_v28 = vadd.f32 %v731_v27, %v244_v26  ;;  %v1418_v29 = vpop.f32.mrb[5].mxu0 }
 0xc46   : > { %1627 = vtanh.f32 %v735_v28  ;;  %v1306_v31 = vmul.f32 -1.442695, %v735_v28 }
 0xc48   : > { %1629 = vpow2.f32 %v1306_v31 }
 0xc50   : > { %v1628_v30 = vpop.eup %1627 }
 0xc51   : > { %745 = vrot.lane.b32.xlu0 %v1628_v30, %s1840_s27 }
 0xc52   : > { %v1630_v32 = vpop.eup %1629 }
 0xc53   : > { %v739_v33 = vadd.f32 1.0, %v1630_v32 }
 0xc55   : > { %1631 = vrcp.f32 %v739_v33 }
 0xc5f   : > { %v1632_v34 = vpop.eup %1631 }
 0xc60   : > { %v743_v37 = vmul.f32 %v1632_v34, %v653_v19 }
 0xcc3   : > { %v746_v35 = vpop.permute.xlu0 %745 }
 0xcc4   : > { %v748_v36 = vmul.f32 %v1632_v34, %v746_v35 }
 0xcc6   : > { %750 = vrot.lane.b32.xlu1 %v748_v36, %s1841_s0 }
 0xd38   : > { %v751_v38 = vpop.permute.xlu1 %750 }
 0xd39   : > { %v753_v39 = vadd.f32 %v751_v38, %v743_v37  ;;  %v1089_v37 = vld [vmem:[#allocation9] sm:$0xff]  ;;  %v1090_v38 = vld [vmem:[#allocation9 + $0x8] sm:$0xff] }
 0xd3b   : > { %1633 = vtanh.f32 %v753_v39 }
 0xd45   : > { %v1634_v40 = vpop.eup %1633 }
 0xd46   : > { %756 = vrot.lane.b32.xlu0 %v1634_v40, %s1840_s27  ;;  %v1512_v40 = vpack.c.bf16 %v1090_v38, %v1089_v37 }
 0xdb8   : > { %v757_v41 = vpop.permute.xlu0 %756 }
 0xdb9   : > { %v759_v42 = vmul.f32 %v1632_v34, %v757_v41  ;;  %v1092_v41 = vld [vmem:[#allocation9 + $0x18] sm:$0xff] }
 0xdbb   : > { %v1066_v43 = vrot.slane %v759_v42, 4  ;;  %761 = vrot.lane.b32.xlu1 %v759_v42, %s1841_s0 }
 0xdbd   : > { %v1082_v44 = vsel %vm1081_vm5, %v1080_v24, %v1066_v43 }
 0xe2d   : > { %v762_v45 = vpop.permute.xlu1 %761 }
 0xe2e   : > { %1428 = vmatmul.mubr.msk.f32.vlgmr.msra.gmra.mrb[4].mxu1 %vm261_vm1, %v762_v45 }
 0xe2f   : > { %1507 = vmatpush3.bf16.msra.mxu1 %v2048_v5  ;;  %1449 = vmatprep.mubr.msk.f32.mxu1 %vm1838_vm0, %v1839_v1 }
 0xe30   : > { %1508 = vmatprep.subr.bf16.mxu1 %v1837_v0 }
 0xe33   : > { %1510 = vmatpush3.bf16.msra.mxu1 %v2051_v7 }
 0xf01   : > { %v831_v47 = vpop.f32.mrb[4].mxu1 }
 0xf02   : > { %v835_v48 = vadd.f32 %v831_v47, %v248_v46  ;;  %v1429_v49 = vpop.f32.mrb[5].mxu1 }
 0xf03   : > { %v1313_v49 = vld [vmem:[%s2208_s4] ss:$0 sm:$0xff] }
 0xf04   : > { %1635 = vtanh.f32 %v835_v48  ;;  %v1308_v51 = vmul.f32 -1.442695, %v835_v48 }
 0xf06   : > { %1637 = vpow2.f32 %v1308_v51 }
 0xf0e   : > { %v1636_v50 = vpop.eup %1635 }
 0xf0f   : > { %845 = vrot.lane.b32.xlu0 %v1636_v50, %s1840_s27 }
 0xf10   : > { %v1638_v5 = vpop.eup %1637 }
 0xf11   : > { %v839_v52 = vadd.f32 1.0, %v1638_v5 }
 0xf13   : > { %1639 = vrcp.f32 %v839_v52 }
 0xf1d   : > { %v1640_v53 = vpop.eup %1639 }
 0xf1e   : > { %v843_v7 = vmul.f32 %v1640_v53, %v753_v39  ;;  %v1091_v39 = vld [vmem:[#allocation9 + $0x10] sm:$0xff] }
 0xf1f   : > { %v1515_v42 = vpack.c.bf16 %v1092_v41, %v1091_v39 }
 0xf81   : > { %v846_v54 = vpop.permute.xlu0 %845 }
 0xf82   : > { %v848_v55 = vmul.f32 %v1640_v53, %v846_v54 }
 0xf84   : > { %850 = vrot.lane.b32.xlu1 %v848_v55, %s1841_s0 }
 0xff6   : > { %v851_v56 = vpop.permute.xlu1 %850 }
 0xff7   : > { %v853_v57 = vadd.f32 %v851_v56, %v843_v7 }
 0xff9   : > { %1641 = vtanh.f32 %v853_v57 }
0x1003   : > { %v1642_v58 = vpop.eup %1641 }
0x1004   : > { %856 = vrot.lane.b32.xlu0 %v1642_v58, %s1840_s27 }
0x1076   : > { %v857_v59 = vpop.permute.xlu0 %856 }
0x1077   : > { %v859_v60 = vmul.f32 %v1640_v53, %v857_v59 }
0x1079   : > { %v1068_v61 = vrot.slane %v859_v60, 3  ;;  %861 = vrot.lane.b32.xlu1 %v859_v60, %s1841_s0 }
0x107b   : > { %v1084_v62 = vsel %vm1083_vm6, %v1082_v44, %v1068_v61 }
0x10eb   : > { %v862_v63 = vpop.permute.xlu1 %861 }
0x10ec   : > { %1439 = vmatmul.mubr.msk.f32.vlgmr.msra.gmra.mrb[6].mxu0 %vm261_vm1, %v862_v63 }
0x10ed   : > { %1460 = vmatprep.mubr.msk.f32.mxu0 %vm1838_vm0, %v1839_v1  ;;  %1513 = vmatpush3.bf16.msra.mxu0 %v1512_v40 }
0x10ee   : > { %1514 = vmatprep.subr.bf16.mxu0 %v1837_v0 }
0x10f1   : > { %1516 = vmatpush3.bf16.msra.mxu0 %v1515_v42 }
0x11bf   : > { %v931_v3 = vpop.f32.mrb[6].mxu0 }
0x11c0   : > { %v935_v4 = vadd.f32 %v931_v3, %v252_v2  ;;  %v1440_v6 = vpop.f32.mrb[7].mxu0 }
0x11c2   : > { %1643 = vtanh.f32 %v935_v4  ;;  %v1310_v9 = vmul.f32 -1.442695, %v935_v4 }
0x11c4   : > { %1645 = vpow2.f32 %v1310_v9 }
0x11cc   : > { %v1644_v8 = vpop.eup %1643 }
0x11cd   : > { %945 = vrot.lane.b32.xlu0 %v1644_v8, %s1840_s27 }
0x11ce   : > { %v1646_v10 = vpop.eup %1645 }
0x11cf   : > { %v939_v11 = vadd.f32 1.0, %v1646_v10 }
0x11d1   : > { %1647 = vrcp.f32 %v939_v11 }
0x11db   : > { %v1648_v12 = vpop.eup %1647 }
0x11dc   : > { %v943_v1 = vmul.f32 %v1648_v12, %v853_v57 }
0x123f   : > { %v946_v13 = vpop.permute.xlu0 %945 }
0x1240   : > { %v948_v14 = vmul.f32 %v1648_v12, %v946_v13 }
0x1242   : > { %950 = vrot.lane.b32.xlu1 %v948_v14, %s1841_s0 }
0x12b4   : > { %v951_v15 = vpop.permute.xlu1 %950 }
0x12b5   : > { %v953_v16 = vadd.f32 %v951_v15, %v943_v1 }
0x12b7   : > { %1649 = vtanh.f32 %v953_v16 }
0x12c1   : > { %v1650_v17 = vpop.eup %1649 }
0x12c2   : > { %956 = vrot.lane.b32.xlu0 %v1650_v17, %s1840_s27 }
0x1334   : > { %v957_v18 = vpop.permute.xlu0 %956 }
0x1335   : > { %v959_v19 = vmul.f32 %v1648_v12, %v957_v18 }
0x1337   : > { %v1070_v20 = vrot.slane %v959_v19, 2  ;;  %961 = vrot.lane.b32.xlu1 %v959_v19, %s1841_s0 }
0x1339   : > { %v1086_v21 = vsel %vm1085_vm7, %v1084_v62, %v1070_v20 }
0x13a9   : > { %v962_v22 = vpop.permute.xlu1 %961 }
0x13aa   : > { %1450 = vmatmul.mubr.msk.f32.vlgmr.msra.gmra.mrb[6].mxu1 %vm261_vm1, %v962_v22 }
0x147d   : > { %v1031_v24 = vpop.f32.mrb[6].mxu1 }
0x147e   : > { %v1035_v25 = vadd.f32 %v1031_v24, %v256_v23  ;;  %v1451_v26 = vpop.f32.mrb[7].mxu1 }
0x1480   : > { %1651 = vtanh.f32 %v1035_v25  ;;  %v1312_v28 = vmul.f32 -1.442695, %v1035_v25 }
0x1482   : > { %1653 = vpow2.f32 %v1312_v28 }
0x148a   : > { %v1652_v27 = vpop.eup %1651 }
0x148b   : > { %1045 = vrot.lane.b32.xlu0 %v1652_v27, %s1840_s27 }
0x148c   : > { %v1654_v29 = vpop.eup %1653 }
0x148d   : > { %v1039_v30 = vadd.f32 1.0, %v1654_v29 }
0x148f   : > { %1655 = vrcp.f32 %v1039_v30 }
0x1499   : > { %v1656_v31 = vpop.eup %1655 }
0x149a   : > { %v1043_v34 = vmul.f32 %v1656_v31, %v953_v16 }
0x14fd   : > { %v1046_v32 = vpop.permute.xlu0 %1045 }
0x14fe   : > { %v1048_v33 = vmul.f32 %v1656_v31, %v1046_v32 }
0x1500   : > { %1050 = vrot.lane.b32.xlu1 %v1048_v33, %s1841_s0 }
0x1572   : > { %v1051_v35 = vpop.permute.xlu1 %1050 }
0x1573   : > { %v1053_v36 = vadd.f32 %v1051_v35, %v1043_v34 }
0x1575   : > { %1657 = vtanh.f32 %v1053_v36 }
0x157f   : > { %v1658_v43 = vpop.eup %1657 }
0x1580   : > { %1056 = vrot.lane.b32.xlu0 %v1658_v43, %s1840_s27  ;;  %s222_s27 = sand.u32 1, %s1821_s29  }
0x1581   : > { %s1188_s17 = scalar_lea.sflag [#allocation6], %s222_s27 }
0x15f2   : > { %v1057_v44 = vpop.permute.xlu0 %1056 }
0x15f3   : > { %v1059_v45 = vmul.f32 %v1656_v31, %v1057_v44 }
0x15f5   : > { %v1073_v46 = vrot.slane %v1059_v45, 1 }
0x15f7   : > { %v1088_v47 = vsel %vm1087_vm8, %v1086_v21, %v1073_v46 }
0x15f8   : > { %1101 = vrot.lane.b32.xlu1 %v1088_v47, %s1841_s0  ;;  %s1296_s0 = sshll.u32 %s222_s27, 3 }
0x15f9   : > { %s224_s9 = scalar_lea.vmem [#allocation10], %s1296_s0 }
0x15fa   : > { %s1201_s10 = sshll.u32 %s224_s9, 4  ;;  %s2164_s10 = int_to_ptr.vmem [resolvable:$true] %s1201_s10 }
0x15fb   : > { %s1757_s21 = scalar_lea.vmem %s2164_s10, 128  ;;  %p1764_p0 = scmp.lt.s32.totalorder %s2164_s10, %s1762_s18 }
0x15fc   : > { %p1758_p1 = scmp.ne.s32.totalorder %s2164_s10, %s1757_s21  ;;  %p1765_p2 = scmp.lt.s32.totalorder %s1763_s22, %s1757_s21 }
0x15fe   : > { %p1759_p10 = pnand %p1758_p1, %p2223_p7  ;;  %p1766_p4 = por %p1765_p2, %p1764_p0 }
0x1600   : > { %p1760_p11 = pneg %p1759_p10 }
0x1602   : > { %p1767_p9 = pnand %p1766_p4, %p1760_p11 }
0x166a   : > { %v1102_v48 = vpop.permute.xlu1 %1101 }
0x166b   : > { %1461 = vmatmul.mubr.msk.f32.vlgmr.msra.gmra.mrb[8].mxu0 %vm261_vm1, %v1102_v48 }
0x173e   : > { %v1171_v0 = vpop.f32.mrb[8].mxu0 }
0x173f   : > { %v1172_v50 = vadd.f32 %v1313_v49, %v1171_v0  ;;  %v1462_v51 = vpop.f32.mrb[9].mxu0 }
0x1741   : > { %1175 = vmax.xlane.f32.xlu0 %v1172_v50 }
0x17ce   : > { %v1176_v5 = vpop.xlane.xlu0 %1175 }
0x17cf   : > { %v1177_v52 = vsub.f32 %v1172_v50, %v1176_v5 }
0x17d1   : > { %v1178_v53 = vmul.f32 1.442695, %v1177_v52 }
0x17d3   : > { %1659 = vpow2.f32 %v1178_v53 }
0x17dd   : > { %v1660_v54 = vpop.eup %1659 }
0x17de   : > { %1180 = vadd.xlane.f32.xlu1 %v1660_v54 }
0x186b   : > { %v1181_v55 = vpop.xlane.xlu1 %1180 }
0x186c   : > { %1661 = vlog2.f32 %v1181_v55 }
0x1876   : > { %v1662_v7 = vpop.eup %1661 }
0x1877   : > { %v1183_v56 = vmul.f32 0.6931472, %v1662_v7 }
0x1879   : > { %v1184_v57 = vadd.f32 %v1183_v56, %v1176_v5 }
0x187b   : > { %v1185_v58 = vsub.f32 %v1172_v50, %v1184_v57 }
0x187d   : > { %1186 = vst [vmem:[%s224_s9] sm:$0xff] %v1185_v58 }
0x187e   : > { %1770 = shalt.err (!%p1767_p9)
}
0x187f   : > { %s1771_s14 = scalar_lea.hbm %s2162_s20, 128  ;;  %s1775_s25 = scalar_lea.hbm %s2209_s5, 512 }
0x1880   : > { %p1772_p12 = scmp.ne.s32.totalorder %s2162_s20, %s1771_s14  ;;  %p1776_p6 = scmp.lt.u32.totalorder %s2162_s20, %s2209_s5 }
0x1881   : > { %p1777_p8 = scmp.lt.u32.totalorder %s1775_s25, %s1771_s14  ;;  %p1779_p1 = scmp.lt.u32.totalorder %s1771_s14, %s2162_s20 }
0x1882   : > { %p1773_p5 = pnand %p1772_p12, %p2223_p7 }
0x1883   : > { %p1778_p13 = por %p1777_p8, %p1776_p6 }
0x1884   : > { %p1774_p3 = pneg %p1773_p5 }
0x1885   : > { %p1780_p10 = por %p1779_p1, %p1778_p13 }
0x1887   : > { %p1781_p11 = pnand %p1780_p10, %p1774_p3 }
0x1889   : > { %1784 = shalt.err (!%p1781_p11)
}
0x188a   : > { %1529 = dma.vmem_to_hbm [thread:$0]  (%p2223_p7), %s2164_s10, 128, %s2162_s20, %s1188_s17  }
0x188b PF: > { %p1551_p0 = scmp.ge.s32.totalorder %s1829_s6, 2  ;;  %s1213_s27 = sand.u32 1, %s1817_s28  }
0x188c   : > { %p2224_p2 = scmp.ne.s32.totalorder %s2214_s13, 0  ;;  %s1214_s0 = scalar_lea.sflag [#allocation6], %s1213_s27 }
0x188e   : > { %p1542_p4 = pnand %p1551_p0, %p2224_p2 }
0x1890   : > { %1812 = dma.done.wait (!%p1542_p4), %s1214_s0, 128  }
0x1891   : > { %1814 = vsyncadd (!%p1542_p4), %s1214_s0, 4294967168  ;;  %p21_p9 = scmp.ge.s32.totalorder %s1910_s8, 6   ;;  %s2225_s28 = smov %s1821_s29 }
0x1892   : > { %s2226_s29 = smov %s1825_s30  ;;  %s2227_s30 = smov %s1921_s11 }
0x1893   : > { %s2228_s6 = smov %s1910_s8  ;;  %23 = sbr.rel (!%p21_p9) target bundleno = 17 (0x11), region = 89 }
0x189a   :  { %1219 = vsyncpa [#allocation5], 1 }
0x189b   :  { %1221 = vsyncpa [#allocation5 + $0x1], 1 }
0x189c   :  { %1222 = vsyncpa [#allocation8], 1 }
0x189d   :  { %1223 = vsyncpa [#allocation6], 1 }
0x189e   :  { %1225 = vsyncpa [#allocation6 + $0x1], 1 }

</bundles_post_ra>
